<compile_context>
chip_gen: v7x
topology: tpu7x:2x2x1
jax: 0.10.0
libtpu: 0.0.40
codegen_flags: <defaults>
</compile_context>

<pallas_src>
import jax
import jax.numpy as jnp
from jax import lax
from jax.experimental import pallas as pl
from jax.experimental.pallas import tpu as pltpu

FEATURE_DIM = 512
HIDDEN_DIM = 128
OUT_CHANNELS = 10
OUT_PAD = 128          # lane-dense padded logits width
BN_EPS = 1e-5
LEAKY_SLOPE = 0.01


def _round_up(x, m):
    return ((x + m - 1) // m) * m


# ----------------------------------------------------------------------------
# Pallas kernel: fused MLP head (BN pre-folded) + clamp + masked softmax
# ----------------------------------------------------------------------------
def _mlp_head_kernel(f_ref, w1_ref, b1_ref, w2_ref, b2_ref, w3_ref, b3_ref,
                     o_ref):
    f = f_ref[...]                                                  # (TB, 512) bf16

    # Linear(512 -> 128) [BN folded] + LeakyReLU      (f32 accumulate/epilogue)
    h = jnp.dot(f, w1_ref[...], preferred_element_type=jnp.float32) + b1_ref[...]
    h = jnp.where(h > 0, h, LEAKY_SLOPE * h)

    # Linear(128 -> 128) [BN folded] + LeakyReLU
    h = jnp.dot(h.astype(jnp.bfloat16), w2_ref[...],
                preferred_element_type=jnp.float32) + b2_ref[...]
    h = jnp.where(h > 0, h, LEAKY_SLOPE * h)

    # Linear(128 -> OUT_PAD), clamp, then mask padded lanes to -inf
    logits = jnp.dot(h.astype(jnp.bfloat16), w3_ref[...],
                     preferred_element_type=jnp.float32) + b3_ref[...]
    logits = jnp.clip(logits, -10.0, 10.0)                          # torch.clamp
    lane = lax.broadcasted_iota(jnp.int32, logits.shape, 1)
    logits = jnp.where(lane < OUT_CHANNELS, logits, -jnp.inf)       # after clamp!

    # softmax(dim=1) — padded lanes contribute exp(-inf) = 0
    logits = logits - jnp.max(logits, axis=1, keepdims=True)
    e = jnp.exp(logits)
    denom = jnp.sum(e, axis=1, keepdims=True)
    o_ref[...] = e * pl.reciprocal(denom, approx=True)


def _fold_bn(w, b, gamma, beta, mean, var):
    """Fold eval-mode BatchNorm1d into the preceding Linear."""
    s = gamma * lax.rsqrt(var + BN_EPS)           # (1, C)
    return w * s, (b - mean) * s + beta           # (in, C), (1, C)


def mlp_head(features, p, tile_b=None):
    B = features.shape[0]

    # Fold BN into linears (outside the kernel), pad final layer to 128 lanes.
    w1f, b1f = _fold_bn(p["w1"], p["b1"], p["g1"], p["beta1"], p["m1"], p["v1"])
    w2f, b2f = _fold_bn(p["w2"], p["b2"], p["g2"], p["beta2"], p["m2"], p["v2"])
    w3p = jnp.zeros((HIDDEN_DIM, OUT_PAD), jnp.float32).at[:, :OUT_CHANNELS].set(p["w3"])
    b3p = jnp.zeros((1, OUT_PAD), jnp.float32).at[:, :OUT_CHANNELS].set(p["b3"])

    # bf16 MXU operands; biases / epilogue stay f32.
    w1b = w1f.astype(jnp.bfloat16)
    w2b = w2f.astype(jnp.bfloat16)
    w3b = w3p.astype(jnp.bfloat16)

    # Batch tile: sublane-aligned (multiple of 16 for bf16), capped well under
    # the 32 MiB scoped / 64 MiB v7x VMEM budget with double buffering.
    if tile_b is None:
        tile_b = min(512, _round_up(max(B, 1), 16))
    Bp = _round_up(B, tile_b)

    f = features.astype(jnp.bfloat16)
    if Bp != B:
        f = jnp.pad(f, ((0, Bp - B), (0, 0)))

    grid = (Bp // tile_b,)

    flops = 2 * Bp * (FEATURE_DIM * HIDDEN_DIM
                      + HIDDEN_DIM * HIDDEN_DIM
                      + HIDDEN_DIM * OUT_PAD)
    bytes_accessed = (Bp * FEATURE_DIM * 2
                      + (FEATURE_DIM * HIDDEN_DIM + 2 * HIDDEN_DIM * HIDDEN_DIM
                         + HIDDEN_DIM * OUT_PAD) * 2
                      + 3 * HIDDEN_DIM * 4 + OUT_PAD * 4
                      + Bp * OUT_PAD * 4)
    cost = pl.CostEstimate(flops=flops,
                           transcendentals=Bp * OUT_PAD,
                           bytes_accessed=bytes_accessed)

    out = pl.pallas_call(
        _mlp_head_kernel,
        out_shape=jax.ShapeDtypeStruct((Bp, OUT_PAD), jnp.float32),
        grid=grid,
        in_specs=[
            pl.BlockSpec((tile_b, FEATURE_DIM), lambda i: (i, 0)),     # features (streamed)
            pl.BlockSpec((FEATURE_DIM, HIDDEN_DIM), lambda i: (0, 0)), # w1 (resident)
            pl.BlockSpec((1, HIDDEN_DIM), lambda i: (0, 0)),           # b1
            pl.BlockSpec((HIDDEN_DIM, HIDDEN_DIM), lambda i: (0, 0)),  # w2
            pl.BlockSpec((1, HIDDEN_DIM), lambda i: (0, 0)),           # b2
            pl.BlockSpec((HIDDEN_DIM, OUT_PAD), lambda i: (0, 0)),     # w3 (padded)
            pl.BlockSpec((1, OUT_PAD), lambda i: (0, 0)),              # b3 (padded)
        ],
        out_specs=pl.BlockSpec((tile_b, OUT_PAD), lambda i: (i, 0)),
        compiler_params=pltpu.CompilerParams(
            dimension_semantics=("parallel",)),
        cost_estimate=cost,
    )(f, w1b, b1f, w2b, b2f, w3b, b3p)

    return out[:B, :OUT_CHANNELS]


# ----------------------------------------------------------------------------
# Frozen feature extractor: ResNet18 body (children[:-1]) in plain JAX (NCHW)
# ----------------------------------------------------------------------------
def _conv2d(x, w, stride, padding):
    return lax.conv_general_dilated(
        x, w,
        window_strides=(stride, stride),
        padding=[(padding, padding), (padding, padding)],
        dimension_numbers=('NCHW', 'OIHW', 'NCHW'))


def _bn2d(x, gamma, beta, mean, var):
    s = (1, -1, 1, 1)
    return ((x - mean.reshape(s)) * lax.rsqrt(var.reshape(s) + BN_EPS)
            * gamma.reshape(s) + beta.reshape(s))


def make_resnet18_params(key):
    def conv_w(k, out_c, in_c, ksz):
        fan_in = in_c * ksz * ksz
        return jax.random.normal(k, (out_c, in_c, ksz, ksz), jnp.float32) * jnp.sqrt(2.0 / fan_in)

    def bn_p(c):
        return dict(gamma=jnp.ones((c,), jnp.float32), beta=jnp.zeros((c,), jnp.float32),
                    mean=jnp.zeros((c,), jnp.float32), var=jnp.ones((c,), jnp.float32))

    keys = iter(jax.random.split(key, 64))
    params = {"conv1": conv_w(next(keys), 64, 3, 7), "bn1": bn_p(64)}
    in_c = 64
    stages = []
    for si, out_c in enumerate([64, 128, 256, 512]):
        blocks = []
        for bi in range(2):
            stride = 2 if (si > 0 and bi == 0) else 1
            blk = {
                "conv1": conv_w(next(keys), out_c, in_c, 3), "bn1": bn_p(out_c),
                "conv2": conv_w(next(keys), out_c, out_c, 3), "bn2": bn_p(out_c),
                "stride": stride,
            }
            if stride != 1 or in_c != out_c:
                blk["down_conv"] = conv_w(next(keys), out_c, in_c, 1)
                blk["down_bn"] = bn_p(out_c)
            blocks.append(blk)
            in_c = out_c
        stages.append(blocks)
    params["stages"] = stages
    return params


def resnet18_features(x, params):
    # stem: conv7x7/2 -> bn -> relu -> maxpool3x3/2
    x = _conv2d(x, params["conv1"], 2, 3)
    x = _bn2d(x, **params["bn1"])
    x = jax.nn.relu(x)
    x = lax.reduce_window(x, -jnp.inf, lax.max,
                          (1, 1, 3, 3), (1, 1, 2, 2),
                          [(0, 0), (0, 0), (1, 1), (1, 1)])
    # 4 stages x 2 BasicBlocks
    for blocks in params["stages"]:
        for blk in blocks:
            identity = x
            h = _conv2d(x, blk["conv1"], blk["stride"], 1)
            h = jax.nn.relu(_bn2d(h, **blk["bn1"]))
            h = _conv2d(h, blk["conv2"], 1, 1)
            h = _bn2d(h, **blk["bn2"])
            if "down_conv" in blk:
                identity = _conv2d(identity, blk["down_conv"], blk["stride"], 0)
                identity = _bn2d(identity, **blk["down_bn"])
            x = jax.nn.relu(h + identity)
    # adaptive avgpool to (1,1) then out.view(B, -1)
    return jnp.mean(x, axis=(2, 3))                                  # (B, 512)


# ----------------------------------------------------------------------------
# MLP-head parameters (deterministic, PyTorch-default-style init)
# ----------------------------------------------------------------------------
def make_mlp_params(key):
    def lin(k, fin, fout):
        bound = 1.0 / jnp.sqrt(fin)
        kw, kb = jax.random.split(k)
        w = jax.random.uniform(kw, (fin, fout), jnp.float32, -bound, bound)
        b = jax.random.uniform(kb, (1, fout), jnp.float32, -bound, bound)
        return w, b

    k1, k2, k3 = jax.random.split(key, 3)
    w1, b1 = lin(k1, FEATURE_DIM, HIDDEN_DIM)
    w2, b2 = lin(k2, HIDDEN_DIM, HIDDEN_DIM)
    w3, b3 = lin(k3, HIDDEN_DIM, OUT_CHANNELS)

    def bn_p(c):
        return (jnp.ones((1, c), jnp.float32), jnp.zeros((1, c), jnp.float32),
                jnp.zeros((1, c), jnp.float32), jnp.ones((1, c), jnp.float32))

    g1, beta1, m1, v1 = bn_p(HIDDEN_DIM)
    g2, beta2, m2, v2 = bn_p(HIDDEN_DIM)
    return dict(w1=w1, b1=b1, g1=g1, beta1=beta1, m1=m1, v1=v1,
                w2=w2, b2=b2, g2=g2, beta2=beta2, m2=m2, v2=v2,
                w3=w3, b3=b3)


def mlp_cal_with_pretrained_model(x, fe_params, mlp_params):
    feats = resnet18_features(x, fe_params)            # frozen extractor (glue)
    return mlp_head(feats, mlp_params)                 # Pallas hot path


if __name__ == "__main__":
    key = jax.random.PRNGKey(0)
    kx, kf, km = jax.random.split(key, 3)

    # Small CIFAR-like input, NCHW as in PyTorch.
    x = jax.random.normal(kx, (2, 3, 32, 32), jnp.float32)

    fe_params = make_resnet18_params(kf)
    mlp_params = make_mlp_params(km)

    out = mlp_cal_with_pretrained_model(x, fe_params, mlp_params)
    out = jax.block_until_ready(out)

    assert out.shape == (2, OUT_CHANNELS)
    assert bool(jnp.all(jnp.isfinite(out)))
    # approx EUP reciprocal + bf16 matmul operands -> relaxed row-sum tolerance
    assert bool(jnp.allclose(jnp.sum(out, axis=1), 1.0, atol=5e-3))
    assert bool(jnp.all(out >= 0.0))
    print("KERNEL_OK")
</pallas_src>

<mosaic_0001>
module attributes {stable_mosaic.version = 11 : i64} {
  func.func @_mlp_head_kernel(%arg0: i32, %arg1: memref<16x512xbf16, #tpu.memory_space<vmem>>, %arg2: memref<512x128xbf16, #tpu.memory_space<vmem>>, %arg3: memref<1x128xf32, #tpu.memory_space<vmem>>, %arg4: memref<128x128xbf16, #tpu.memory_space<vmem>>, %arg5: memref<1x128xf32, #tpu.memory_space<vmem>>, %arg6: memref<128x128xbf16, #tpu.memory_space<vmem>>, %arg7: memref<1x128xf32, #tpu.memory_space<vmem>>, %arg8: memref<16x128xf32, #tpu.memory_space<vmem>>) attributes {dimension_semantics = [#tpu.dimension_semantics<parallel>], iteration_bounds = array<i64: 1>, scalar_prefetch = 0 : i64, scratch_operands = 0 : i64, tpu.core_type = #tpu.core_type<tc>, window_params = [{transform_indices = @transform_0, window_bounds = array<i64: 16, 512>}, {pipeline_mode = #tpu.pipeline_mode<synchronous>, transform_indices = @transform_1, window_bounds = array<i64: 512, 128>}, {pipeline_mode = #tpu.pipeline_mode<synchronous>, transform_indices = @transform_2, window_bounds = array<i64: 1, 128>}, {pipeline_mode = #tpu.pipeline_mode<synchronous>, transform_indices = @transform_3, window_bounds = array<i64: 128, 128>}, {pipeline_mode = #tpu.pipeline_mode<synchronous>, transform_indices = @transform_4, window_bounds = array<i64: 1, 128>}, {pipeline_mode = #tpu.pipeline_mode<synchronous>, transform_indices = @transform_5, window_bounds = array<i64: 128, 128>}, {pipeline_mode = #tpu.pipeline_mode<synchronous>, transform_indices = @transform_6, window_bounds = array<i64: 1, 128>}, {transform_indices = @transform_7, window_bounds = array<i64: 16, 128>}]} {
    %c0 = arith.constant 0 : index
    %c0_0 = arith.constant 0 : index
    %0 = vector.load %arg1[%c0, %c0_0] : memref<16x512xbf16, #tpu.memory_space<vmem>>, vector<16x512xbf16>
    %c0_1 = arith.constant 0 : index
    %c0_2 = arith.constant 0 : index
    %1 = vector.load %arg2[%c0_1, %c0_2] : memref<512x128xbf16, #tpu.memory_space<vmem>>, vector<512x128xbf16>
    %cst = arith.constant dense<0.000000e+00> : vector<16x128xf32>
    %2 = tpu.matmul %0, %1, %cst {dimension_numbers = #tpu.dot_dimension_numbers<[1], [0], [0], [1], [0, 0, 1, 1], [], []>} : vector<16x512xbf16>, vector<512x128xbf16>, vector<16x128xf32> -> vector<16x128xf32>
    %c0_3 = arith.constant 0 : index
    %c0_4 = arith.constant 0 : index
    %3 = vector.load %arg3[%c0_3, %c0_4] : memref<1x128xf32, #tpu.memory_space<vmem>>, vector<1x128xf32>
    %4 = vector.broadcast %3 : vector<1x128xf32> to vector<16x128xf32>
    %5 = arith.addf %2, %4 : vector<16x128xf32>
    %cst_5 = arith.constant 0.000000e+00 : f32
    %6 = vector.broadcast %cst_5 : f32 to vector<16x128xf32>
    %7 = arith.cmpf ogt, %5, %6 : vector<16x128xf32>
    %cst_6 = arith.constant 0.00999999977 : f32
    %8 = vector.broadcast %cst_6 : f32 to vector<16x128xf32>
    %9 = arith.mulf %8, %5 : vector<16x128xf32>
    %10 = arith.select %7, %5, %9 : vector<16x128xi1>, vector<16x128xf32>
    %11 = arith.truncf %10 : vector<16x128xf32> to vector<16x128xbf16>
    %c0_7 = arith.constant 0 : index
    %c0_8 = arith.constant 0 : index
    %12 = vector.load %arg4[%c0_7, %c0_8] : memref<128x128xbf16, #tpu.memory_space<vmem>>, vector<128x128xbf16>
    %cst_9 = arith.constant dense<0.000000e+00> : vector<16x128xf32>
    %13 = tpu.matmul %11, %12, %cst_9 {dimension_numbers = #tpu.dot_dimension_numbers<[1], [0], [0], [1], [0, 0, 1, 1], [], []>} : vector<16x128xbf16>, vector<128x128xbf16>, vector<16x128xf32> -> vector<16x128xf32>
    %c0_10 = arith.constant 0 : index
    %c0_11 = arith.constant 0 : index
    %14 = vector.load %arg5[%c0_10, %c0_11] : memref<1x128xf32, #tpu.memory_space<vmem>>, vector<1x128xf32>
    %15 = vector.broadcast %14 : vector<1x128xf32> to vector<16x128xf32>
    %16 = arith.addf %13, %15 : vector<16x128xf32>
    %cst_12 = arith.constant 0.000000e+00 : f32
    %17 = vector.broadcast %cst_12 : f32 to vector<16x128xf32>
    %18 = arith.cmpf ogt, %16, %17 : vector<16x128xf32>
    %cst_13 = arith.constant 0.00999999977 : f32
    %19 = vector.broadcast %cst_13 : f32 to vector<16x128xf32>
    %20 = arith.mulf %19, %16 : vector<16x128xf32>
    %21 = arith.select %18, %16, %20 : vector<16x128xi1>, vector<16x128xf32>
    %22 = arith.truncf %21 : vector<16x128xf32> to vector<16x128xbf16>
    %c0_14 = arith.constant 0 : index
    %c0_15 = arith.constant 0 : index
    %23 = vector.load %arg6[%c0_14, %c0_15] : memref<128x128xbf16, #tpu.memory_space<vmem>>, vector<128x128xbf16>
    %cst_16 = arith.constant dense<0.000000e+00> : vector<16x128xf32>
    %24 = tpu.matmul %22, %23, %cst_16 {dimension_numbers = #tpu.dot_dimension_numbers<[1], [0], [0], [1], [0, 0, 1, 1], [], []>} : vector<16x128xbf16>, vector<128x128xbf16>, vector<16x128xf32> -> vector<16x128xf32>
    %c0_17 = arith.constant 0 : index
    %c0_18 = arith.constant 0 : index
    %25 = vector.load %arg7[%c0_17, %c0_18] : memref<1x128xf32, #tpu.memory_space<vmem>>, vector<1x128xf32>
    %26 = vector.broadcast %25 : vector<1x128xf32> to vector<16x128xf32>
    %27 = arith.addf %24, %26 : vector<16x128xf32>
    %cst_19 = arith.constant -1.000000e+01 : f32
    %cst_20 = arith.constant 1.000000e+01 : f32
    %28 = vector.broadcast %cst_19 : f32 to vector<16x128xf32>
    %29 = arith.maximumf %28, %27 : vector<16x128xf32>
    %30 = vector.broadcast %cst_20 : f32 to vector<16x128xf32>
    %31 = arith.minimumf %30, %29 : vector<16x128xf32>
    %32 = tpu.iota {dimensions = array<i32: 1>} : vector<16x128xi32>
    %c10_i32 = arith.constant 10 : i32
    %33 = vector.broadcast %c10_i32 : i32 to vector<16x128xi32>
    %34 = arith.cmpi slt, %32, %33 : vector<16x128xi32>
    %cst_21 = arith.constant 0xFF800000 : f32
    %35 = vector.broadcast %cst_21 : f32 to vector<16x128xf32>
    %36 = arith.select %34, %31, %35 : vector<16x128xi1>, vector<16x128xf32>
    %cst_22 = arith.constant dense<0xFF800000> : vector<16xf32>
    %37 = vector.multi_reduction <maximumf>, %36, %cst_22 [1] : vector<16x128xf32> to vector<16xf32>
    %38 = vector.shape_cast %37 : vector<16xf32> to vector<16x1xf32>
    %39 = vector.broadcast %38 : vector<16x1xf32> to vector<16x128xf32>
    %40 = arith.subf %36, %39 : vector<16x128xf32>
    %41 = math.exp %40 : vector<16x128xf32>
    %cst_23 = arith.constant dense<0.000000e+00> : vector<16xf32>
    %42 = vector.multi_reduction <add>, %41, %cst_23 [1] : vector<16x128xf32> to vector<16xf32>
    %43 = vector.shape_cast %42 : vector<16xf32> to vector<16x1xf32>
    %44 = tpu.reciprocal %43 {approx = true} : vector<16x1xf32> -> vector<16x1xf32>
    %45 = vector.broadcast %44 : vector<16x1xf32> to vector<16x128xf32>
    %46 = arith.mulf %41, %45 : vector<16x128xf32>
    %c0_24 = arith.constant 0 : index
    %c0_25 = arith.constant 0 : index
    %47 = vector.load %arg8[%c0_24, %c0_25] : memref<16x128xf32, #tpu.memory_space<vmem>>, vector<16x128xf32>
    tpu.vector_store %arg8[%c0_24, %c0_25], %46 {strides = array<i32>} : memref<16x128xf32, #tpu.memory_space<vmem>>, vector<16x128xf32>,
    return
  }
  func.func @transform_0(%arg0: i32) -> (i32, i32) {
    %c0_i32 = arith.constant 0 : i32
    %c0_i32_0 = arith.constant 0 : i32
    return %arg0, %c0_i32 : i32, i32
  }
  func.func @transform_1(%arg0: i32) -> (i32, i32) {
    %c0_i32 = arith.constant 0 : i32
    %c0_i32_0 = arith.constant 0 : i32
    %c0_i32_1 = arith.constant 0 : i32
    return %c0_i32, %c0_i32_0 : i32, i32
  }
  func.func @transform_2(%arg0: i32) -> (i32, i32) {
    %c0_i32 = arith.constant 0 : i32
    %c0_i32_0 = arith.constant 0 : i32
    %c0_i32_1 = arith.constant 0 : i32
    return %c0_i32, %c0_i32_0 : i32, i32
  }
  func.func @transform_3(%arg0: i32) -> (i32, i32) {
    %c0_i32 = arith.constant 0 : i32
    %c0_i32_0 = arith.constant 0 : i32
    %c0_i32_1 = arith.constant 0 : i32
    return %c0_i32, %c0_i32_0 : i32, i32
  }
  func.func @transform_4(%arg0: i32) -> (i32, i32) {
    %c0_i32 = arith.constant 0 : i32
    %c0_i32_0 = arith.constant 0 : i32
    %c0_i32_1 = arith.constant 0 : i32
    return %c0_i32, %c0_i32_0 : i32, i32
  }
  func.func @transform_5(%arg0: i32) -> (i32, i32) {
    %c0_i32 = arith.constant 0 : i32
    %c0_i32_0 = arith.constant 0 : i32
    %c0_i32_1 = arith.constant 0 : i32
    return %c0_i32, %c0_i32_0 : i32, i32
  }
  func.func @transform_6(%arg0: i32) -> (i32, i32) {
    %c0_i32 = arith.constant 0 : i32
    %c0_i32_0 = arith.constant 0 : i32
    %c0_i32_1 = arith.constant 0 : i32
    return %c0_i32, %c0_i32_0 : i32, i32
  }
  func.func @transform_7(%arg0: i32) -> (i32, i32) {
    %c0_i32 = arith.constant 0 : i32
    %c0_i32_0 = arith.constant 0 : i32
    return %arg0, %c0_i32 : i32, i32
  }
}

</mosaic_0001>

<bundles_post_ra>
// kernel: tpu_custom_call.1
= control target key start
LH: loop header
LB: loop body
LE: loop exit
PB: predicated region body
PF: predicated region fallthrough
CT: control target
= control target key end

     0   :  { %12 = vsyncpa [#allocation3], 0  ;;  %s1246_s0 = inlined_call_operand.hbm [shape: bf16[16,512], index: 0, kind: input, shape index: {}]   ;;  %s1247_s1 = inlined_call_operand.hbm [shape: bf16[512,128], index: 1, kind: input, shape index: {}]   ;;  %s1248_s2 = inlined_call_operand.vmem [shape: f32[1,128], index: 2, kind: input, shape index: {}]   ;;  %s1249_s3 = inlined_call_operand.hbm [shape: bf16[128,128], index: 3, kind: input, shape index: {}]   ;;  %s1250_s4 = inlined_call_operand.vmem [shape: f32[1,128], index: 4, kind: input, shape index: {}]   ;;  %s1251_s5 = inlined_call_operand.hbm [shape: bf16[128,128], index: 5, kind: input, shape index: {}]   ;;  %s1252_s6 = inlined_call_operand.vmem [shape: f32[1,128], index: 6, kind: input, shape index: {}]   ;;  %s1253_s7 = inlined_call_operand.hbm [shape: f32[16,128], index: 7, kind: output, shape index: {}]  }
   0x1   :  { %13 = vsyncpa [#allocation6], 0 }
   0x2   :  { %14 = vsyncpa [#allocation9], 0 }
   0x3   :  { %15 = vsyncpa [#allocation4], 0  ;;  %s1090_s24 = smov [#allocation5]   ;;  %s972_s28 = scalar_lea.hbm %s1247_s1, 4096 }
   0x4   :  { %s33_s25 = sshll.u32 %s1090_s24, 4  ;;  %p973_p0 = scmp.ne.s32.totalorder %s1247_s1, %s972_s28  ;;  %s34_s25 = int_to_ptr.vmem [resolvable:$true] %s33_s25 }
   0x5   :  { %p976_p1 = scmp.lt.u32.totalorder %s972_s28, %s1247_s1 }
   0x7   :  { %p978_p2 = pnand %p976_p1, %p973_p0 }
   0x9   :  { %981 = shalt.err (!%p978_p2)
}
   0xa   :  { %s982_s10 = scalar_lea.vmem %s34_s25, 4096  ;;  %p987_p4 = scmp.lt.s32.totalorder %s34_s25, %s34_s25 }
   0xb   :  { %p983_p3 = scmp.ne.s32.totalorder %s34_s25, %s982_s10  ;;  %p988_p5 = scmp.lt.s32.totalorder %s982_s10, %s982_s10 }
   0xd   :  { %p989_p6 = por %p988_p5, %p987_p4 }
   0xf   :  { %p990_p7 = pnand %p989_p6, %p983_p3 }
  0x11   :  { %993 = shalt.err (!%p990_p7)
}
  0x12   :  { %s1091_s11 = smov 64   ;;  %s1092_s12 = smov 4  }
  0x13   :  { %39 = dma.hbm_to_vmem [thread:$0]  %s1247_s1, 4096, %s34_s25, [#allocation6], %s1091_s11, %s1091_s11, %s1092_s12  }
  0x14   :  { %s1093_s15 = smov [#allocation2]   ;;  %s994_s19 = scalar_lea.hbm %s1246_s0, 512 }
  0x15   :  { %s21_s16 = sshll.u32 %s1093_s15, 4  ;;  %p995_p8 = scmp.ne.s32.totalorder %s1246_s0, %s994_s19  ;;  %s22_s16 = int_to_ptr.vmem [resolvable:$true] %s21_s16 }
  0x16   :  { %p998_p9 = scmp.lt.u32.totalorder %s994_s19, %s1246_s0 }
  0x18   :  { %p1000_p10 = pnand %p998_p9, %p995_p8 }
  0x1a   :  { %1003 = shalt.err (!%p1000_p10)
}
  0x1b   :  { %s1004_s24 = scalar_lea.vmem %s22_s16, 512  ;;  %p1009_p12 = scmp.lt.s32.totalorder %s22_s16, %s22_s16 }
  0x1c   :  { %p1005_p11 = scmp.ne.s32.totalorder %s22_s16, %s1004_s24  ;;  %p1010_p13 = scmp.lt.s32.totalorder %s1004_s24, %s1004_s24 }
  0x1e   :  { %p1011_p0 = por %p1010_p13, %p1009_p12 }
  0x20   :  { %p1012_p1 = pnand %p1011_p0, %p1005_p11 }
  0x22   :  { %1015 = shalt.err (!%p1012_p1)
}
  0x23   :  { %s1094_s1 = smov 256   ;;  %s1095_s25 = smov 16  }
  0x24   :  { %27 = dma.hbm_to_vmem [thread:$0]  %s1246_s0, 512, %s22_s16, [#allocation3], %s1094_s1, %s1094_s1, %s1095_s25  }
  0x25   :  { %s1096_s28 = smov [#allocation7]   ;;  %s1097_s30 = smov [#allocation8]  }
  0x26   :  { %s47_s29 = sshll.u32 %s1096_s28, 4  ;;  %s61_s8 = sshll.u32 %s1097_s30, 4  ;;  %s48_s29 = int_to_ptr.vmem [resolvable:$true] %s47_s29  ;;  %s1170_s8 = int_to_ptr.vmem [resolvable:$true] %s61_s8 }
  0x27   :  { %s1016_s13 = scalar_lea.hbm %s1249_s3, 1024 }
  0x28   :  { %p1017_p2 = scmp.ne.s32.totalorder %s1249_s3, %s1016_s13  ;;  %p1020_p3 = scmp.lt.u32.totalorder %s1016_s13, %s1249_s3 }
  0x2a   :  { %p1022_p4 = pnand %p1020_p3, %p1017_p2 }
  0x2c   :  { %1025 = shalt.err (!%p1022_p4)
}
  0x2d   :  { %s1026_s0 = scalar_lea.vmem %s48_s29, 1024  ;;  %p1031_p6 = scmp.lt.s32.totalorder %s48_s29, %s48_s29 }
  0x2e   :  { %p1027_p5 = scmp.ne.s32.totalorder %s48_s29, %s1026_s0  ;;  %p1032_p7 = scmp.lt.s32.totalorder %s1026_s0, %s1026_s0 }
  0x30   :  { %p1033_p8 = por %p1032_p7, %p1031_p6 }
  0x32   :  { %p1034_p9 = pnand %p1033_p8, %p1027_p5 }
  0x34   :  { %1037 = shalt.err (!%p1034_p9)
}
  0x35   :  { %53 = dma.hbm_to_vmem [thread:$0]  %s1249_s3, 1024, %s48_s29, [#allocation6], %s1091_s11, %s1091_s11, %s1092_s12  }
  0x36   :  { %s1038_s22 = scalar_lea.hbm %s1251_s5, 1024 }
  0x37   :  { %p1039_p10 = scmp.ne.s32.totalorder %s1251_s5, %s1038_s22  ;;  %p1042_p11 = scmp.lt.u32.totalorder %s1038_s22, %s1251_s5 }
  0x39   :  { %p1044_p12 = pnand %p1042_p11, %p1039_p10 }
  0x3b   :  { %1047 = shalt.err (!%p1044_p12)
}
  0x3c   :  { %s1048_s26 = scalar_lea.vmem %s1170_s8, 1024  ;;  %p1053_p0 = scmp.lt.s32.totalorder %s1170_s8, %s1170_s8 }
  0x3d   :  { %p1049_p13 = scmp.ne.s32.totalorder %s1170_s8, %s1048_s26  ;;  %p1054_p1 = scmp.lt.s32.totalorder %s1048_s26, %s1048_s26 }
  0x3f   :  { %p1055_p2 = por %p1054_p1, %p1053_p0 }
  0x41   :  { %p1056_p3 = pnand %p1055_p2, %p1049_p13 }
  0x43   :  { %1059 = shalt.err (!%p1056_p3)
}
  0x44   :  { %67 = dma.hbm_to_vmem [thread:$0]  %s1251_s5, 1024, %s1170_s8, [#allocation9], %s1091_s11, %s1091_s11, %s1092_s12  }
  0x45   :  { %1082 = dma.done.wait [#allocation3], 512  }
  0x46   :  { %1083 = vsyncadd [#allocation3], 4294966784 }
  0x47   :  { %1084 = dma.done.wait [#allocation6], 5120  }
  0x48   :  { %1085 = vsyncadd [#allocation6], 4294962176 }
  0x49   :  { %1086 = dma.done.wait [#allocation9], 1024  }
  0x4a   :  { %1087 = vsyncadd [#allocation9], 4294966272  ;;  %v910_v0 = vld [vmem:[#allocation5 + $0x40] sm:$0xff]   ;;  %v914_v4 = vld [vmem:[#allocation5 + $0x48] sm:$0xff]   ;;  %v1098_v34 = vmov 0.0   ;;  %vm1099_vm0 = vmmov 0  }
  0x4b   :  { %v911_v1 = vld [vmem:[#allocation5 + $0xc0] sm:$0xff]   ;;  %795 = vmatprep.subr.bf16.mxu0 %v910_v0  ;;  %v915_v5 = vld [vmem:[#allocation5 + $0xc8] sm:$0xff]   ;;  %v918_v8 = vld [vmem:[#allocation5 + $0x50] sm:$0xff]  }
  0x4c   :  { %v912_v2 = vld [vmem:[#allocation5] sm:$0xff]   ;;  %817 = vmatprep.subr.bf16.mxu1 %v911_v1  ;;  %v916_v6 = vld [vmem:[#allocation5 + $0x8] sm:$0xff]   ;;  %v919_v9 = vld [vmem:[#allocation5 + $0xd0] sm:$0xff]  }
  0x4d   :  { %v913_v3 = vld [vmem:[#allocation5 + $0x80] sm:$0xff]   ;;  %796 = vmatpush3.bf16.msra.mxu0 %v912_v2  ;;  %v917_v7 = vld [vmem:[#allocation5 + $0x88] sm:$0xff]   ;;  %v920_v10 = vld [vmem:[#allocation5 + $0x10] sm:$0xff]  }
  0x4e   :  { %818 = vmatpush3.bf16.msra.mxu1 %v913_v3  ;;  %797 = vmatprep.subr.bf16.mxu0 %v914_v4  ;;  %v921_v11 = vld [vmem:[#allocation5 + $0x90] sm:$0xff]   ;;  %v922_v12 = vld [vmem:[#allocation5 + $0x58] sm:$0xff]   ;;  %v926_v16 = vld [vmem:[#allocation5 + $0x60] sm:$0xff]  }
  0x4f   :  { %819 = vmatprep.subr.bf16.mxu1 %v915_v5  ;;  %v923_v13 = vld [vmem:[#allocation5 + $0xd8] sm:$0xff]   ;;  %v927_v17 = vld [vmem:[#allocation5 + $0xe0] sm:$0xff]   ;;  %v930_v20 = vld [vmem:[#allocation5 + $0x68] sm:$0xff]  }
  0x50   :  { %v924_v14 = vld [vmem:[#allocation5 + $0x18] sm:$0xff]   ;;  %v928_v18 = vld [vmem:[#allocation5 + $0x20] sm:$0xff]   ;;  %v931_v21 = vld [vmem:[#allocation5 + $0xe8] sm:$0xff]  }
  0x51   :  { %798 = vmatpush3.bf16.msra.mxu0 %v916_v6  ;;  %v925_v15 = vld [vmem:[#allocation5 + $0x98] sm:$0xff]   ;;  %v929_v19 = vld [vmem:[#allocation5 + $0xa0] sm:$0xff]   ;;  %v932_v22 = vld [vmem:[#allocation5 + $0x28] sm:$0xff]  }
  0x52   :  { %820 = vmatpush3.bf16.msra.mxu1 %v917_v7  ;;  %799 = vmatprep.subr.bf16.mxu0 %v918_v8  ;;  %v933_v23 = vld [vmem:[#allocation5 + $0xa8] sm:$0xff]   ;;  %v934_v24 = vld [vmem:[#allocation5 + $0x70] sm:$0xff]   ;;  %v938_v28 = vld [vmem:[#allocation5 + $0x78] sm:$0xff]  }
  0x53   :  { %821 = vmatprep.subr.bf16.mxu1 %v919_v9  ;;  %v935_v25 = vld [vmem:[#allocation5 + $0xf0] sm:$0xff]   ;;  %v939_v29 = vld [vmem:[#allocation5 + $0xf8] sm:$0xff]   ;;  %v948_v37 = vld [vmem:[#allocation7] sm:$0xff]  }
  0x54   :  { %v936_v26 = vld [vmem:[#allocation5 + $0x30] sm:$0xff]   ;;  %v940_v30 = vld [vmem:[#allocation5 + $0x38] sm:$0xff]   ;;  %v949_v38 = vld [vmem:[#allocation7 + $0x8] sm:$0xff]  }
  0x55   :  { %800 = vmatpush3.bf16.msra.mxu0 %v920_v10  ;;  %v937_v27 = vld [vmem:[#allocation5 + $0xb0] sm:$0xff]   ;;  %v941_v31 = vld [vmem:[#allocation5 + $0xb8] sm:$0xff]   ;;  %v952_v41 = vld [vmem:[#allocation7 + $0x20] sm:$0xff]  }
  0x56   :  { %822 = vmatpush3.bf16.msra.mxu1 %v921_v11  ;;  %801 = vmatprep.subr.bf16.mxu0 %v922_v12  ;;  %v942_v32 = vld [vmem:[#allocation2] ss:$16 sps:$4 sm:$0xff]   ;;  %v944_v33 = vld [vmem:[#allocation2 + $0x4] ss:$16 sps:$4 sm:$0xff]   ;;  %v945_v35 = vld [vmem:[#allocation2 + $0x8] ss:$16 sps:$4 sm:$0xff]  }
  0x57   :  { %823 = vmatprep.subr.bf16.mxu1 %v923_v13  ;;  %v947_v36 = vld [vmem:[#allocation2 + $0xc] ss:$16 sps:$4 sm:$0xff]   ;;  %402 = vmatprep.mubr.bf16.mxu0 %v944_v33  ;;  %v950_v39 = vld [vmem:[#allocation7 + $0x10] sm:$0xff]   ;;  %v956_v45 = vld [vmem:[#allocation8] sm:$0xff]  }
  0x58   :  { %443 = vmatprep.mubr.bf16.mxu1 %v947_v36  ;;  %v951_v40 = vld [vmem:[#allocation7 + $0x18] sm:$0xff]   ;;  %v953_v42 = vld [vmem:[#allocation7 + $0x28] sm:$0xff]   ;;  %v954_v43 = vld [vmem:[#allocation7 + $0x30] sm:$0xff]  }
  0x59   :  { %802 = vmatpush3.bf16.msra.mxu0 %v924_v14  ;;  %v955_v44 = vld [vmem:[#allocation7 + $0x38] sm:$0xff]   ;;  %v957_v46 = vld [vmem:[#allocation8 + $0x8] sm:$0xff]   ;;  %v958_v47 = vld [vmem:[#allocation8 + $0x10] sm:$0xff]  }
  0x5a   :  { %824 = vmatpush3.bf16.msra.mxu1 %v925_v15  ;;  %803 = vmatprep.subr.bf16.mxu0 %v926_v16  ;;  %v959_v48 = vld [vmem:[#allocation8 + $0x18] sm:$0xff]   ;;  %v960_v49 = vld [vmem:[#allocation8 + $0x20] sm:$0xff]   ;;  %v961_v50 = vld [vmem:[#allocation8 + $0x28] sm:$0xff]  }
  0x5b   :  { %825 = vmatprep.subr.bf16.mxu1 %v927_v17  ;;  %v738_v53 = vld [vmem:[%s1248_s2] ss:$0 sm:$0xff]  ;;  %v962_v9 = vld [vmem:[#allocation8 + $0x30] sm:$0xff]   ;;  %v963_v10 = vld [vmem:[#allocation8 + $0x38] sm:$0xff]  }
  0x5c   :  { %v775_v11 = vld [vmem:[%s1250_s4] ss:$0 sm:$0xff]  ;;  %s1100_s4 = smov [#allocation10]  }
  0x5d   :  { %804 = vmatpush3.bf16.msra.mxu0 %v928_v18 }
  0x5e   :  { %826 = vmatpush3.bf16.msra.mxu1 %v929_v19  ;;  %805 = vmatprep.subr.bf16.mxu0 %v930_v20 }
  0x5f   :  { %827 = vmatprep.subr.bf16.mxu1 %v931_v21 }
  0x61   :  { %806 = vmatpush3.bf16.msra.mxu0 %v932_v22 }
  0x62   :  { %828 = vmatpush3.bf16.msra.mxu1 %v933_v23  ;;  %807 = vmatprep.subr.bf16.mxu0 %v934_v24  ;;  %v694_v23 = vlaneseq  ;;  %v784_v24 = vld [vmem:[%s1252_s6] ss:$0 sm:$0xff]  ;;  %s724_s6 = sshll.u32 %s1100_s4, 4  ;;  %s725_s6 = int_to_ptr.vmem [resolvable:$true] %s724_s6 }
  0x63   :  { %829 = vmatprep.subr.bf16.mxu1 %v935_v25  ;;  %s1060_s30 = scalar_lea.vmem %s725_s6, 256  ;;  %p1065_p5 = scmp.lt.s32.totalorder %s725_s6, %s725_s6 }
  0x64   :  { %v695_v25 = vand.u32 127, %v694_v23  ;;  %p1061_p4 = scmp.ne.s32.totalorder %s725_s6, %s1060_s30  ;;  %p1066_p6 = scmp.lt.s32.totalorder %s1060_s30, %s1060_s30 }
  0x65   :  { %808 = vmatpush3.bf16.msra.mxu0 %v936_v26 }
  0x66   :  { %830 = vmatpush3.bf16.msra.mxu1 %v937_v27  ;;  %809 = vmatprep.subr.bf16.mxu0 %v938_v28  ;;  %vm696_vm5 = vcmp.lt.s32.totalorder %v695_v25, 10  ;;  %p1067_p7 = por %p1066_p6, %p1065_p5 }
  0x67   :  { %831 = vmatprep.subr.bf16.mxu1 %v939_v29 }
  0x68   :  { %p1068_p8 = pnand %p1067_p7, %p1061_p4 }
  0x69   :  { %810 = vmatpush3.bf16.msra.mxu0 %v940_v30 }
  0x6a   :  { %832 = vmatpush3.bf16.msra.mxu1 %v941_v31  ;;  %857 = vmatprep.subr.bf16.mxu0 %v1098_v34 }
  0x6b   :  { %877 = vmatprep.subr.bf16.mxu1 %v1098_v34 }
  0x6c   :  { %403 = vmatmul.mubr.bf16.vlgmr.msra.gmra.mrb[0].mxu0 %v942_v32 }
  0x6d   :  { %444 = vmatmul.mubr.bf16.vlgmr.msra.gmra.mrb[0].mxu1 %v945_v35  ;;  %858 = vmatpush3.bf16.msra.mxu0 %v948_v37 }
  0x6e   :  { %859 = vmatprep.subr.bf16.mxu0 %v1098_v34  ;;  %873 = vmatprep.mubr.msk.bf16.mxu0 %vm1099_vm0, %v1098_v34 }
  0x6f   :  { %893 = vmatprep.mubr.msk.bf16.mxu1 %vm1099_vm0, %v1098_v34  ;;  %878 = vmatpush3.bf16.msra.mxu1 %v956_v45 }
  0x70   :  { %879 = vmatprep.subr.bf16.mxu1 %v1098_v34 }
  0x71   :  { %860 = vmatpush3.bf16.msra.mxu0 %v949_v38 }
  0x72   :  { %861 = vmatprep.subr.bf16.mxu0 %v1098_v34 }
  0x73   :  { %880 = vmatpush3.bf16.msra.mxu1 %v957_v46 }
  0x74   :  { %881 = vmatprep.subr.bf16.mxu1 %v1098_v34 }
  0x75   :  { %862 = vmatpush3.bf16.msra.mxu0 %v950_v39 }
  0x76   :  { %863 = vmatprep.subr.bf16.mxu0 %v1098_v34 }
  0x77   :  { %882 = vmatpush3.bf16.msra.mxu1 %v958_v47 }
  0x78   :  { %883 = vmatprep.subr.bf16.mxu1 %v1098_v34 }
  0x79   :  { %864 = vmatpush3.bf16.msra.mxu0 %v951_v40 }
  0x7a   :  { %865 = vmatprep.subr.bf16.mxu0 %v1098_v34 }
  0x7b   :  { %884 = vmatpush3.bf16.msra.mxu1 %v959_v48 }
  0x7c   :  { %885 = vmatprep.subr.bf16.mxu1 %v1098_v34 }
  0x7d   :  { %866 = vmatpush3.bf16.msra.mxu0 %v952_v41 }
  0x7e   :  { %867 = vmatprep.subr.bf16.mxu0 %v1098_v34 }
  0x7f   :  { %886 = vmatpush3.bf16.msra.mxu1 %v960_v49 }
  0x80   :  { %887 = vmatprep.subr.bf16.mxu1 %v1098_v34 }
  0x81   :  { %868 = vmatpush3.bf16.msra.mxu0 %v953_v42 }
  0x82   :  { %869 = vmatprep.subr.bf16.mxu0 %v1098_v34 }
  0x83   :  { %888 = vmatpush3.bf16.msra.mxu1 %v961_v50 }
  0x84   :  { %889 = vmatprep.subr.bf16.mxu1 %v1098_v34 }
  0x85   :  { %870 = vmatpush3.bf16.msra.mxu0 %v954_v43 }
  0x86   :  { %871 = vmatprep.subr.bf16.mxu0 %v1098_v34 }
  0x87   :  { %890 = vmatpush3.bf16.msra.mxu1 %v962_v9 }
  0x88   :  { %891 = vmatprep.subr.bf16.mxu1 %v1098_v34 }
  0x89   :  { %872 = vmatpush3.bf16.msra.mxu0 %v955_v44 }
  0x8b   :  { %892 = vmatpush3.bf16.msra.mxu1 %v963_v10 }
 0x13f   :  { %v811_v51 = vpop.f32.mrb[0].mxu0 }
 0x140   :  { %v833_v52 = vpop.f32.mrb[0].mxu1  ;;  %v812_v54 = vpop.f32.mrb[1].mxu0 }
 0x141   :  { %v813_v55 = vadd.f32 %v812_v54, %v811_v51  ;;  %v834_v56 = vpop.f32.mrb[1].mxu1  ;;  %v814_v57 = vpop.f32.mrb[2].mxu0 }
 0x142   :  { %v835_v58 = vadd.f32 %v834_v56, %v833_v52  ;;  %v836_v59 = vpop.f32.mrb[2].mxu1  ;;  %v815_v60 = vpop.f32.mrb[3].mxu0 }
 0x143   :  { %v405_v61 = vadd.f32 %v813_v55, %v738_v53  ;;  %v816_v62 = vadd.f32 %v815_v60, %v814_v57  ;;  %v837_v63 = vpop.f32.mrb[3].mxu1 }
 0x144   :  { %v838_v0 = vadd.f32 %v837_v63, %v836_v59 }
 0x145   :  { %v446_v1 = vadd.f32 %v835_v58, %v405_v61  ;;  %v408_v2 = vadd.f32 %v816_v62, %v738_v53 }
 0x147   :  { %v454_v3 = vmul.f32 0.01, %v446_v1  ;;  %v449_v4 = vadd.f32 %v838_v0, %v408_v2  ;;  %vm452_vm1 = vcmp.gt.f32.partialorder %v446_v1, 0.0 }
 0x149   :  { %vm453_vm2 = vcmp.gt.f32.partialorder %v449_v4, 0.0  ;;  %v455_v5 = vmul.f32 0.01, %v449_v4  ;;  %v456_v6 = vsel %vm452_vm1, %v446_v1, %v454_v3 }
 0x14b   :  { %v457_v7 = vsel %vm453_vm2, %v449_v4, %v455_v5 }
 0x14c   :  { %v458_v8 = vpack.c.bf16 %v457_v7, %v456_v6 }
 0x14e   :  { %874 = vmatmul.mubr.bf16.vlgmr.msra.gmra.mrb[4].mxu0 %v458_v8 }
 0x221   :  { %v564_v12 = vpop.f32.mrb[4].mxu0 }
 0x222   :  { %v565_v13 = vadd.f32 %v775_v11, %v564_v12  ;;  %v875_v14 = vpop.f32.mrb[5].mxu0 }
 0x223   :  { %v567_v15 = vpop.f32.mrb[6].mxu0 }
 0x224   :  { %v573_v16 = vmul.f32 0.01, %v565_v13  ;;  %v568_v17 = vadd.f32 %v775_v11, %v567_v15  ;;  %v876_v18 = vpop.f32.mrb[7].mxu0  ;;  %vm571_vm3 = vcmp.gt.f32.partialorder %v565_v13, 0.0 }
 0x226   :  { %vm572_vm4 = vcmp.gt.f32.partialorder %v568_v17, 0.0  ;;  %v574_v19 = vmul.f32 0.01, %v568_v17  ;;  %v575_v20 = vsel %vm571_vm3, %v565_v13, %v573_v16 }
 0x228   :  { %v576_v21 = vsel %vm572_vm4, %v568_v17, %v574_v19 }
 0x229   :  { %v577_v22 = vpack.c.bf16 %v576_v21, %v575_v20 }
 0x22b   :  { %894 = vmatmul.mubr.bf16.vlgmr.msra.gmra.mrb[4].mxu1 %v577_v22 }
 0x2fe   :  { %v683_v26 = vpop.f32.mrb[4].mxu1 }
 0x2ff   :  { %v684_v27 = vadd.f32 %v784_v24, %v683_v26  ;;  %v895_v28 = vpop.f32.mrb[5].mxu1 }
 0x300   :  { %v686_v29 = vpop.f32.mrb[6].mxu1 }
 0x301   :  { %v793_v30 = vclamps-f32 %v684_v27, 10.0  ;;  %v687_v31 = vadd.f32 %v784_v24, %v686_v29  ;;  %v896_v32 = vpop.f32.mrb[7].mxu1 }
 0x303   :  { %v794_v33 = vclamps-f32 %v687_v31, 10.0  ;;  %v697_v34 = vsel %vm696_vm5, %v793_v30, -inf }
 0x304   :  { %699 = vmax.xlane.f32.xlu0 %v697_v34 }
 0x305   :  { %v698_v35 = vsel %vm696_vm5, %v794_v33, -inf }
 0x308   :  { %701 = vmax.xlane.f32.xlu0 %v698_v35 }
 0x391   :  { %v700_v36 = vpop.xlane.xlu0 %699 }
 0x392   :  { %v703_v37 = vsub.f32 %v697_v34, %v700_v36 }
 0x394   :  { %v705_v38 = vmul.f32 1.442695, %v703_v37 }
 0x395   :  { %v702_v39 = vpop.xlane.xlu0 %701 }
 0x396   :  { %964 = vpow2.f32 %v705_v38  ;;  %v704_v40 = vsub.f32 %v698_v35, %v702_v39 }
 0x398   :  { %v707_v41 = vmul.f32 1.442695, %v704_v40 }
 0x39a   :  { %966 = vpow2.f32 %v707_v41 }
 0x3a0   :  { %v965_v42 = vpop.eup %964 }
 0x3a1   :  { %709 = vadd.xlane.f32.xlu1 %v965_v42 }
 0x3a4   :  { %v967_v43 = vpop.eup %966 }
 0x3a5   :  { %711 = vadd.xlane.f32.xlu1 %v967_v43 }
 0x42e   :  { %v710_v44 = vpop.xlane.xlu1 %709 }
 0x42f   :  { %968 = vrcp.f32 %v710_v44 }
 0x432   :  { %v712_v45 = vpop.xlane.xlu1 %711 }
 0x433   :  { %970 = vrcp.f32 %v712_v45 }
 0x439   :  { %v969_v46 = vpop.eup %968 }
 0x43a   :  { %v715_v47 = vmul.f32 %v969_v46, %v965_v42 }
 0x43c   :  { %717 = vst [vmem:[#allocation10] sm:$0xff] %v715_v47 }
 0x43d   :  { %v971_v48 = vpop.eup %970 }
 0x43e   :  { %v716_v49 = vmul.f32 %v971_v48, %v967_v43 }
 0x440   :  { %718 = vst [vmem:[#allocation10 + $0x8] sm:$0xff] %v716_v49 }
 0x441   :  { %1071 = shalt.err (!%p1068_p8)
}
 0x442   :  { %s1072_s10 = scalar_lea.hbm %s1253_s7, 256 }
 0x443   :  { %p1073_p9 = scmp.ne.s32.totalorder %s1253_s7, %s1072_s10  ;;  %p1076_p10 = scmp.lt.u32.totalorder %s1072_s10, %s1253_s7 }
 0x445   :  { %p1078_p11 = pnand %p1076_p10, %p1073_p9 }
 0x447   :  { %1081 = shalt.err (!%p1078_p11)
}
 0x448   :  { %s1101_s18 = smov 128   ;;  %s1102_s0 = smov 8  }
 0x449   :  { %730 = dma.vmem_to_hbm [thread:$0]  %s725_s6, 256, %s1253_s7, [#allocation4], %s1101_s18, %s1101_s18, %s1102_s0  }
 0x44a   :  { %1088 = dma.done.wait [#allocation4], 256  }
 0x44b   :  { %1089 = vsyncadd [#allocation4], 4294967040 }
 0x44c   :  { %734 = vsyncpa [#allocation3], 1 }
 0x44d   :  { %735 = vsyncpa [#allocation6], 1 }
 0x44e   :  { %736 = vsyncpa [#allocation9], 1 }
 0x44f   :  { %737 = vsyncpa [#allocation4], 1 }

</bundles_post_ra>
